<compile_context>
chip_gen: v7x
topology: tpu7x:2x2x1
jax: 0.10.0
libtpu: 0.0.40
codegen_flags: <defaults>
</compile_context>

<pallas_src>
import jax
import jax.numpy as jnp
from jax import lax
from jax.experimental import pallas as pl
from jax.experimental.pallas import tpu as pltpu


def _rup(v, m):
    return ((v + m - 1) // m) * m


def _rdown(v, m):
    return (v // m) * m


def _cdiv(a, b):
    return -(-a // b)


def _tpu_gen_params():
    """Returns (target HBM bytes per grid step, VMEM budget, min parallel grid points)."""
    kind = ""
    try:
        kind = jax.devices()[0].device_kind.lower()
    except Exception:
        pass
    if "v7" in kind:
        # ~3.2 TB/s HBM, only 64 MiB VMEM per TC, 2 TensorCores per chip.
        return 6 << 20, 40 << 20, 2
    if "v6" in kind:
        return 3 << 20, 96 << 20, 1
    if "v5 lite" in kind or "v5e" in kind or "v5litepod" in kind:
        return 2 << 20, 96 << 20, 1
    # v4 / v5p / unknown: assume a megacore pair and a conservative VMEM budget.
    return 3 << 20, 64 << 20, 2


def _choose_tiles(B, C_in, C_out, N, itemsize, *, target_bytes, vmem_budget,
                  min_parallel, max_tn=None, max_tb=32):
    """Pick (batch tile, token tile) for the channel-major fused linear kernel."""
    per_token_bytes = (C_in + C_out) * itemsize

    # 1. Token tile sized to hit the per-step HBM traffic target (lane-dense).
    tn = max(128, _rdown(target_bytes // per_token_bytes, 128))
    tn = min(tn, _rup(N, 128))
    if max_tn is not None:
        tn = min(tn, max(128, _rdown(int(max_tn), 128)))

    # 2. Batch folding: small spatial maps can never reach the byte target with
    #    a single batch row per block; amortize the per-step overhead across tb.
    tb = 1
    if B > 1 and tn * per_token_bytes < target_bytes:
        tb = min(B, max_tb, _cdiv(target_bytes, tn * per_token_bytes))

    # 3. Guarantee >= min_parallel grid points (v7x megacore: 2 TensorCores).
    while True:
        gb, gn = _cdiv(B, tb), _cdiv(N, tn)
        if gb * gn >= min_parallel:
            break
        if tb > 1:
            tb = _cdiv(tb, 2)
        elif tn > 128:
            tn = max(128, _rup(_cdiv(N, min_parallel), 128))
            break
        else:
            break  # problem too small to split further

    # 4. Rebalance ragged tails (tn stays a multiple of 128 -> lane-dense stores).
    gb, gn = _cdiv(B, tb), _cdiv(N, tn)
    tn = max(128, _rup(_cdiv(N, gn), 128))
    tb = _cdiv(B, gb)

    # 5. VMEM guard. Weight/bias have a constant index_map -> charged once
    #    (resident); x/out tiles are double-buffered by the pipeline; one f32
    #    dot result is live at a time inside the in-kernel batch loop.
    def footprint(tb_, tn_):
        x_t = 2 * tb_ * C_in * tn_ * itemsize
        o_t = 2 * tb_ * C_out * tn_ * itemsize
        w_t = _rup(C_out, 8) * _rup(C_in, 128) * itemsize
        b_t = _rup(C_out, 8) * 128 * itemsize
        acc = C_out * tn_ * 4
        return x_t + o_t + w_t + b_t + acc

    while footprint(tb, tn) > vmem_budget and (tn > 128 or tb > 1):
        if tn > 128:
            tn = max(128, _rup(tn // 2, 128))
        else:
            tb = _cdiv(tb, 2)

    return tb, tn, footprint(tb, tn)


def _fused_linear_kernel(x_ref, w_ref, b_ref, o_ref):
    # x_ref: (tb, C_in, tn)   channel-major activation tile (tokens on lanes)
    # w_ref: (C_out, C_in)    resident, pre-transposed weight (canonical MXU LHS)
    # b_ref: (C_out, 1)       bias, lane-broadcast along tokens
    # o_ref: (tb, C_out, tn)  channel-major output tile (lane-dense stores)
    w = w_ref[...]
    bias = b_ref[...]

    def body(i, carry):
        acc = lax.dot_general(
            w, x_ref[i],
            dimension_numbers=(((1,), (0,)), ((), ())),   # contract over C_in
            preferred_element_type=jnp.float32,
        )                                                  # (C_out, tn), f32 on the MXU
        o_ref[i] = (acc + bias).astype(o_ref.dtype)
        return carry

    lax.fori_loop(0, x_ref.shape[0], body, 0, unroll=True)


def _fused_linear_pallas(x3d, w_t, b, *, max_tn=None):
    """x3d: [B, C_in, N], w_t: [C_out, C_in], b: [C_out] -> [B, C_out, N]."""
    B, C_in, N = x3d.shape
    C_out = w_t.shape[0]
    itemsize = jnp.dtype(x3d.dtype).itemsize

    target_bytes, vmem_budget, min_parallel = _tpu_gen_params()
    tb, tn, footprint = _choose_tiles(
        B, C_in, C_out, N, itemsize,
        target_bytes=target_bytes, vmem_budget=vmem_budget,
        min_parallel=min_parallel, max_tn=max_tn,
    )

    grid = (_cdiv(B, tb), _cdiv(N, tn))
    b2d = b.reshape(C_out, 1)

    cost = pl.CostEstimate(
        flops=2 * B * N * C_in * C_out,
        transcendentals=0,
        bytes_accessed=(x3d.size + w_t.size + b.size + B * C_out * N) * itemsize,
    )
    vmem_limit = int(min(vmem_budget,
                         max(footprint + footprint // 4 + (4 << 20), 16 << 20)))

    return pl.pallas_call(
        _fused_linear_kernel,
        out_shape=jax.ShapeDtypeStruct((B, C_out, N), x3d.dtype),
        grid_spec=pltpu.PrefetchScalarGridSpec(
            num_scalar_prefetch=0,
            grid=grid,
            in_specs=[
                pl.BlockSpec((tb, C_in, tn), lambda bi, j: (bi, 0, j)),
                pl.BlockSpec((C_out, C_in), lambda bi, j: (0, 0)),
                pl.BlockSpec((C_out, 1), lambda bi, j: (0, 0)),
            ],
            out_specs=pl.BlockSpec((tb, C_out, tn), lambda bi, j: (bi, 0, j)),
        ),
        compiler_params=pltpu.CompilerParams(
            dimension_semantics=("parallel", "parallel"),
            vmem_limit_bytes=vmem_limit,
        ),
        cost_estimate=cost,
    )(x3d, w_t, b2d)


def flatten_spatial_dimensions_forward(x, w, b, *, max_tn=None):
    """
    Equivalent of FlattenSpatialDimensions(nn.Linear(C_in, C_out))(x).

    x: [B, C_in, *spatial], w: [C_in, C_out], b: [C_out]  ->  [B, C_out, *spatial]
    (For a mem-bound path like this, bf16 x/out halves wall time on every
     generation; accumulation stays f32 either way.)
    """
    B, C_in = x.shape[0], x.shape[1]
    spatial = x.shape[2:]
    C_out = w.shape[1]

    # flatten(2): contiguous reshape only, no transpose / HBM round trip.
    x3d = x.reshape(B, C_in, -1)                         # [B, C_in, N]
    w_t = jnp.asarray(w).T                               # one-time (C_out, C_in)
    out3d = _fused_linear_pallas(x3d, w_t, b, max_tn=max_tn)
    # Channel-major kernel output already equals permute(0,2,1).view(src_shape).
    return out3d.reshape((B, C_out) + spatial)           # [B, C_out, *spatial]


def _reference(x, w, b):
    B, C_in = x.shape[0], x.shape[1]
    spatial = x.shape[2:]
    C_out = w.shape[1]
    x_t = jnp.transpose(x.reshape(B, C_in, -1), (0, 2, 1))   # [B, N, C_in]
    ref = jnp.einsum("bnc,co->bno", x_t, w) + b              # [B, N, C_out]
    return jnp.transpose(ref, (0, 2, 1)).reshape((B, C_out) + spatial)


if __name__ == "__main__":
    key = jax.random.PRNGKey(0)
    kx, kw, kb, kx2, kx3, kx4 = jax.random.split(key, 6)

    C_in, C_out = 4, 8
    w = jax.random.normal(kw, (C_in, C_out), dtype=jnp.float32) * 0.1
    b = jax.random.normal(kb, (C_out,), dtype=jnp.float32) * 0.1

    # Case 1: standard 2D shapes (B=2, 16x16 -> N=256; batch-folded single step).
    x1 = jax.random.normal(kx, (2, C_in, 16, 16), dtype=jnp.float32)
    out1 = jax.block_until_ready(flatten_spatial_dimensions_forward(x1, w, b))
    assert out1.shape == (2, C_out, 16, 16)
    assert jnp.allclose(out1, _reference(x1, w, b), atol=1e-5, rtol=1e-5)

    # Case 2: ragged token count (N=225) with a forced small tile so the grid
    # has a full block and a masked tail block.
    x2 = jax.random.normal(kx2, (2, C_in, 15, 15), dtype=jnp.float32)
    out2 = jax.block_until_ready(
        flatten_spatial_dimensions_forward(x2, w, b, max_tn=128))
    assert out2.shape == (2, C_out, 15, 15)
    assert jnp.allclose(out2, _reference(x2, w, b), atol=1e-5, rtol=1e-5)

    # Case 3: B=1 (exercises the >=2-grid-point split on megacore parts).
    x3 = jax.random.normal(kx3, (1, C_in, 16, 16), dtype=jnp.float32)
    out3 = jax.block_until_ready(flatten_spatial_dimensions_forward(x3, w, b))
    assert out3.shape == (1, C_out, 16, 16)
    assert jnp.allclose(out3, _reference(x3, w, b), atol=1e-5, rtol=1e-5)

    # Case 4: 3D spatial data with odd batch (B=3, 3x5x7 -> N=105; batch folding
    # with a padded batch tail and a padded token tail).
    x4 = jax.random.normal(kx4, (3, C_in, 3, 5, 7), dtype=jnp.float32)
    out4 = jax.block_until_ready(flatten_spatial_dimensions_forward(x4, w, b))
    assert out4.shape == (3, C_out, 3, 5, 7)
    assert jnp.allclose(out4, _reference(x4, w, b), atol=1e-5, rtol=1e-5)

    print("KERNEL_OK")
</pallas_src>

<mosaic_0001>
module attributes {stable_mosaic.version = 11 : i64} {
  func.func @_fused_linear_kernel(%arg0: i32, %arg1: i32, %arg2: memref<1x4x256xf32, #tpu.memory_space<vmem>>, %arg3: memref<8x4xf32, #tpu.memory_space<vmem>>, %arg4: memref<8x1xf32, #tpu.memory_space<vmem>>, %arg5: memref<1x8x256xf32, #tpu.memory_space<vmem>>) attributes {dimension_semantics = [#tpu.dimension_semantics<parallel>, #tpu.dimension_semantics<parallel>], iteration_bounds = array<i64: 2, 1>, scalar_prefetch = 0 : i64, scratch_operands = 0 : i64, tpu.core_type = #tpu.core_type<tc>, window_params = [{transform_indices = @transform_0, window_bounds = array<i64: 1, 4, 256>}, {pipeline_mode = #tpu.pipeline_mode<synchronous>, transform_indices = @transform_1, window_bounds = array<i64: 8, 4>}, {pipeline_mode = #tpu.pipeline_mode<synchronous>, transform_indices = @transform_2, window_bounds = array<i64: 8, 1>}, {transform_indices = @transform_3, window_bounds = array<i64: 1, 8, 256>}]} {
    %c0 = arith.constant 0 : index
    %c0_0 = arith.constant 0 : index
    %0 = vector.load %arg3[%c0, %c0_0] : memref<8x4xf32, #tpu.memory_space<vmem>>, vector<8x4xf32>
    %c0_1 = arith.constant 0 : index
    %c0_2 = arith.constant 0 : index
    %1 = vector.load %arg4[%c0_1, %c0_2] : memref<8x1xf32, #tpu.memory_space<vmem>>, vector<8x1xf32>
    %c0_i32 = arith.constant 0 : i32
    %2 = arith.index_cast %c0_i32 : i32 to index
    %c0_3 = arith.constant 0 : index
    %c0_4 = arith.constant 0 : index
    %3 = vector.load %arg2[%2, %c0_3, %c0_4] : memref<1x4x256xf32, #tpu.memory_space<vmem>>, vector<1x4x256xf32>
    %4 = vector.shape_cast %3 : vector<1x4x256xf32> to vector<4x256xf32>
    %cst = arith.constant dense<0.000000e+00> : vector<8x256xf32>
    %5 = tpu.matmul %0, %4, %cst {dimension_numbers = #tpu.dot_dimension_numbers<[1], [0], [0], [1], [0, 0, 1, 1], [], []>} : vector<8x4xf32>, vector<4x256xf32>, vector<8x256xf32> -> vector<8x256xf32>
    %6 = vector.broadcast %1 : vector<8x1xf32> to vector<8x256xf32>
    %7 = arith.addf %5, %6 : vector<8x256xf32>
    %8 = arith.index_cast %c0_i32 : i32 to index
    %c0_5 = arith.constant 0 : index
    %c0_6 = arith.constant 0 : index
    %9 = vector.load %arg5[%8, %c0_5, %c0_6] : memref<1x8x256xf32, #tpu.memory_space<vmem>>, vector<1x8x256xf32>
    %10 = vector.shape_cast %9 : vector<1x8x256xf32> to vector<8x256xf32>
    %11 = vector.shape_cast %7 : vector<8x256xf32> to vector<1x8x256xf32>
    tpu.vector_store %arg5[%8, %c0_5, %c0_6], %11 {strides = array<i32>} : memref<1x8x256xf32, #tpu.memory_space<vmem>>, vector<1x8x256xf32>,
    %c1_i32 = arith.constant 1 : i32
    return
  }
  func.func @transform_0(%arg0: i32, %arg1: i32) -> (i32, i32, i32) {
    %c0_i32 = arith.constant 0 : i32
    %c0_i32_0 = arith.constant 0 : i32
    return %arg0, %c0_i32, %arg1 : i32, i32, i32
  }
  func.func @transform_1(%arg0: i32, %arg1: i32) -> (i32, i32) {
    %c0_i32 = arith.constant 0 : i32
    %c0_i32_0 = arith.constant 0 : i32
    %c0_i32_1 = arith.constant 0 : i32
    return %c0_i32, %c0_i32_0 : i32, i32
  }
  func.func @transform_2(%arg0: i32, %arg1: i32) -> (i32, i32) {
    %c0_i32 = arith.constant 0 : i32
    %c0_i32_0 = arith.constant 0 : i32
    %c0_i32_1 = arith.constant 0 : i32
    return %c0_i32, %c0_i32_0 : i32, i32
  }
  func.func @transform_3(%arg0: i32, %arg1: i32) -> (i32, i32, i32) {
    %c0_i32 = arith.constant 0 : i32
    %c0_i32_0 = arith.constant 0 : i32
    return %arg0, %c0_i32, %arg1 : i32, i32, i32
  }
}

</mosaic_0001>

<bundles_post_ra>
// kernel: tpu_custom_call.1
= control target key start
LH: loop header
LB: loop body
LE: loop exit
PB: predicated region body
PF: predicated region fallthrough
CT: control target
= control target key end

     0   :  { %8 = vsyncpa [#allocation3], 0  ;;  %s683_s0 = inlined_call_operand.vmem [shape: f32[2,4,256], index: 0, kind: input, shape index: {}]   ;;  %s684_s1 = inlined_call_operand.vmem [shape: f32[8,4], index: 1, kind: input, shape index: {}]   ;;  %s685_s2 = inlined_call_operand.vmem [shape: f32[8,1], index: 2, kind: input, shape index: {}]   ;;  %s686_s3 = inlined_call_operand.hbm [shape: f32[2,8,256], index: 3, kind: output, shape index: {}]  }
   0x1   :  { %10 = vsyncpa [#allocation3 + $0x1], 0  ;;  %s565_s12 = smov 0   ;;  %s567_s13 = smov 0  }
   0x2   :  { %s569_s14 = smov 0   ;;  %s571_s15 = smov 0  }
   0x3   :  { %s573_s16 = smov 0   ;;  %s575_s17 = smov 0  }
   0x4 LB: > { %s385_s18 = sadd.s32 4294967295, %s540_s17   ;;  %s386_s19 = sadd.s32 4294967294, %s540_s17   ;;  %s540_s17 = sphi %s575_s17, %s16_s17   ;;  %s536_s16 = sphi %s573_s16, %s693_s16   ;;  %s532_s15 = sphi %s571_s15, %s692_s15   ;;  %s528_s14 = sphi %s569_s14, %s691_s14   ;;  %s524_s13 = sphi %s567_s13, %s690_s13   ;;  %s520_s12 = sphi %s565_s12, %s689_s12  }
   0x5   : > { %s28_s20 = sadd.s32 1, %s536_s16  ;;  %s107_s21 = sadd.s32 1, %s528_s14 }
   0x6   : > { %p30_p0 = scmp.ge.s32.totalorder %s28_s20, 2  ;;  %p117_p1 = scmp.ne.s32.totalorder %s528_s14, %s524_s13 }
   0x7   : > { %p118_p2 = scmp.eq.s32.totalorder %s385_s18, 1  ;;  %p123_p3 = scmp.ne.s32.totalorder %s524_s13, %s520_s12 }
   0x8   : > { %s695_s20 = smov (%p30_p0, %s28_s20), 0  ;;  %p124_p5 = scmp.eq.s32.totalorder %s386_s19, 1 }
   0x9   : > { %p605_p4 = por %p118_p2, %p117_p1  ;;  %s102_s23 = ssub.s32 %s536_s16, %s695_s20 }
   0xa   : > { %p389_p6 = scmp.ge.s32.totalorder %s540_s17, 1  ;;  %p105_p7 = scmp.eq.s32.totalorder %s102_s23, 0 }
   0xb   : > { %p612_p8 = por %p124_p5, %p123_p3  ;;  %p161_p9 = scmp.lt.s32.totalorder %s540_s17, 3 }
   0xc   : > { %s618_s25 = scalar_select %p105_p7, %s528_s14, %s107_s21  }
   0xd   : > { %p162_p10 = pnand %p389_p6, %p161_p9 }
   0xe   : > { %p190_p11 = scmp.lt.s32.totalorder (!%p162_p10), %s532_s15, 1  ;;  %v542_v0 = vmov (!%p162_p10), 0.0   ;;  %v543_v1 = vmov (!%p162_p10), 0   ;;  %v201_v2 = vld [vmem:[%s685_s2] sm:$0xff] (!%p162_p10)  ;;  %vm214_vm0 = vcmask (!%p162_p10), 1043456   ;;  %vm210_vm1 = vcmask (!%p162_p10), 31744  }
   0xf   : > { %165 = sbr.rel (%p162_p10) target bundleno = 260 (0x104), region = 32  ;;  %283 = vmatprep.mubr.f32.mxu0 (!%p162_p10), %v542_v0  ;;  %460 = vset.pattern.permute.xlu0 (!%p162_p10), %v543_v1  ;;  %v200_v5 = vld [vmem:[%s684_s1] sm:$0xff] (!%p162_p10)  ;;  %s186_s8 = sand.u32 (!%p162_p10), 1, %s524_s13  }
  0x10   : > { %205 = vperm.xlu0 (!%p162_p10), %460, %v201_v2   ;;  %s390_s9 = sshll.u32 (!%p162_p10), %s186_s8, 4  ;;  %s402_s10 = sshll.u32 (!%p162_p10), %s532_s15, 8 }
  0x11   : > { %s188_s11 = scalar_lea.vmem (!%p162_p10), [#allocation2], %s390_s9  ;;  %s636_s23 = scalar_lea.hbm (!%p162_p10), %s686_s3, %s402_s10 }
  0x12   : > { %s309_s18 = sshll.u32 (!%p162_p10), %s188_s11, 4  ;;  %s293_s26 = scalar_lea.sflag (!%p162_p10), [#allocation3], %s186_s8  ;;  %s638_s18 = int_to_ptr.vmem [resolvable:$true] %s309_s18 }
  0x13   : > { %s544_s27 = smov (!%p162_p10), [#allocation2]  }
  0x16   : > { %s191_s28 = scalar_select %p190_p11, %s532_s15, 1 }
  0x17   : > { %s462_s15 = scalar_lea.vmem %s638_s18, 256 }
  0x18   : > { %s401_s29 = sshll.u32 %s191_s28, 3  ;;  %p463_p12 = scmp.ne.s32.totalorder %s638_s18, %s462_s15 }
  0x19   : > { %s197_s5 = scalar_lea.vmem %s683_s0, %s401_s29  ;;  %s466_s28 = sshll.u32 %s544_s27, 4  ;;  %s467_s28 = int_to_ptr.vmem [resolvable:$false] %s466_s28 }
  0x1a   : > { %v202_v3 = vld [vmem:[%s197_s5] sm:$0xff]  ;;  %p464_p13 = pnand %p463_p12, %p605_p4  ;;  %s468_s29 = scalar_lea.vmem %s467_s28, 512 }
  0x1b   : > { %v209_v4 = vcombine.high %v202_v3, %v202_v3  ;;  %p469_p1 = scmp.lt.s32.totalorder %s638_s18, %s467_s28  ;;  %p470_p2 = scmp.lt.s32.totalorder %s468_s29, %s462_s15 }
  0x1c   : > { %p465_p0 = pneg %p464_p13 }
  0x1d   : > { %393 = vmatprep.subr.msk.mxu0 %vm214_vm0, %v209_v4  ;;  %p471_p3 = por %p470_p2, %p469_p1 }
  0x1e   : > { %394 = vmatpush1.msk.msra.mxu0 %vm214_vm0, %v202_v3 }
  0x1f   : > { %395 = vmatmul.mubr.msk.f32.vlgmr.msra.gmra.mrb[0].mxu0 %vm210_vm1, %v200_v5  ;;  %p472_p5 = pnand %p471_p3, %p465_p0 }
  0x8f   : > { %v206_v6 = vpop.permute.xlu0 %205 }
  0xf2   : > { %v285_v7 = vpop.f32.mrb[0].mxu0 }
  0xf3   : > { %v286_v8 = vadd.f32 %v285_v7, %v206_v6  ;;  %v287_v9 = vpop.f32.mrb[1].mxu0 }
  0xf4   : > { %v288_v10 = vadd.f32 %v287_v9, %v206_v6 }
  0xf5   : > { %290 = vst [vmem:[%s188_s11] sm:$0xff] %v286_v8 }
  0xf6   : > { %291 = vst [vmem:[%s188_s11 + $0x8] sm:$0xff] %v288_v10 }
  0xf7   : > { %475 = shalt.err (!%p472_p5)
}
  0xf8   : > { %s476_s30 = scalar_lea.hbm %s636_s23, 256  ;;  %s480_s6 = scalar_lea.hbm %s686_s3, 512 }
  0xf9   : > { %p477_p6 = scmp.ne.s32.totalorder %s636_s23, %s476_s30  ;;  %p481_p10 = scmp.lt.u32.totalorder %s636_s23, %s686_s3 }
  0xfa   : > { %p482_p11 = scmp.lt.u32.totalorder %s480_s6, %s476_s30  ;;  %p484_p13 = scmp.lt.u32.totalorder %s476_s30, %s636_s23 }
  0xfb   : > { %p478_p7 = pnand %p477_p6, %p605_p4 }
  0xfc   : > { %p483_p12 = por %p482_p11, %p481_p10 }
  0xfd   : > { %p479_p9 = pneg %p478_p7 }
  0xfe   : > { %p485_p0 = por %p484_p13, %p483_p12 }
 0x100   : > { %p486_p1 = pnand %p485_p0, %p479_p9 }
 0x102   : > { %489 = shalt.err (!%p486_p1)
}
 0x103   : > { %403 = dma.vmem_to_hbm [thread:$0]  (%p605_p4), %s638_s18, 256, %s636_s23, %s293_s26  }
 0x104 PF: > { %p409_p2 = scmp.ge.s32.totalorder %s540_s17, 2  ;;  %s321_s9 = sand.u32 1, %s520_s12  }
 0x105   : > { %s322_s10 = scalar_lea.sflag [#allocation3], %s321_s9 }
 0x106   : > { %p406_p3 = pnand %p409_p2, %p612_p8 }
 0x108   : > { %515 = dma.done.wait (!%p406_p3), %s322_s10, 256  }
 0x109   : > { %517 = vsyncadd (!%p406_p3), %s322_s10, 4294967040  ;;  %s16_s17 = sadd.s32 1, %s540_s17   ;;  %s689_s12 = smov %s524_s13 }
 0x10a   : > { %p13_p5 = scmp.ge.s32.totalorder %s16_s17, 4   ;;  %s690_s13 = smov %s528_s14 }
 0x10b   : > { %s691_s14 = smov %s618_s25  ;;  %s692_s15 = smov %s536_s16 }
 0x10c   : > { %s693_s16 = smov %s695_s20  ;;  %15 = sbr.rel (!%p13_p5) target bundleno = 4 (0x4), region = 67 }
 0x113   :  { %327 = vsyncpa [#allocation3], 1 }
 0x114   :  { %329 = vsyncpa [#allocation3 + $0x1], 1 }

</bundles_post_ra>
